<compile_context>
chip_gen: v7x
topology: tpu7x:2x2x1
jax: 0.10.0
libtpu: 0.0.40
codegen_flags: <defaults>
</compile_context>

<pallas_src>
import functools

import jax
import jax.numpy as jnp
from jax.experimental import pallas as pl
from jax.experimental.pallas import tpu as pltpu


# ----------------------------------------------------------------------------
# Pallas kernel: one (tm, tn) output tile of  A @ B + bias  with K-reduction
# carried in a float32 VMEM accumulator.
# ----------------------------------------------------------------------------
def _matmul_bias_kernel(a_ref, b_ref, bias_ref, o_ref, acc_ref):
    k_idx = pl.program_id(2)

    @pl.when(k_idx == 0)
    def _():
        acc_ref[...] = jnp.zeros_like(acc_ref)

    acc_ref[...] += jnp.dot(
        a_ref[...],
        b_ref[...],
        preferred_element_type=jnp.float32,
        precision=jax.lax.Precision.HIGHEST,
    )

    @pl.when(k_idx == pl.num_programs(2) - 1)
    def _():
        o_ref[...] = (acc_ref[...] + bias_ref[...]).astype(o_ref.dtype)


def _matmul_bias(a, b, bias2d, *, tm, tk, tn):
    m, kdim = a.shape
    _, n = b.shape
    grid = (m // tm, n // tn, kdim // tk)
    return pl.pallas_call(
        _matmul_bias_kernel,
        out_shape=jax.ShapeDtypeStruct((m, n), jnp.float32),
        grid=grid,
        in_specs=[
            pl.BlockSpec((tm, tk), lambda i, j, kk: (i, kk)),
            pl.BlockSpec((tk, tn), lambda i, j, kk: (kk, j)),
            pl.BlockSpec((1, tn), lambda i, j, kk: (0, j)),
        ],
        out_specs=pl.BlockSpec((tm, tn), lambda i, j, kk: (i, j)),
        scratch_shapes=[pltpu.VMEM((tm, tn), jnp.float32)],
        compiler_params=pltpu.CompilerParams(
            dimension_semantics=("parallel", "parallel", "arbitrary")),
    )(a, b, bias2d)


# ----------------------------------------------------------------------------
# Wrapper: im2col + padding + Pallas matmul, reshaped back to NCDHW.
# ----------------------------------------------------------------------------
def _round_up(v, m):
    return ((v + m - 1) // m) * m


def _im2col(x, k, p):
    """(N, C, D, H, W) -> (N*D*H*W, C*k^3) patch matrix (K ordered c-major)."""
    n, c, d, h, w = x.shape
    xp = jnp.pad(x, ((0, 0), (0, 0), (p, p), (p, p), (p, p)))
    taps = []
    for kd in range(k):
        for kh in range(k):
            for kw in range(k):
                taps.append(xp[:, :, kd:kd + d, kh:kh + h, kw:kw + w])
    pat = jnp.stack(taps, axis=0)           # (k^3, N, C, D, H, W)
    pat = pat.transpose(1, 3, 4, 5, 2, 0)   # (N, D, H, W, C, k^3)
    return pat.reshape(n * d * h * w, c * k * k * k)


@functools.partial(jax.jit, static_argnames=("tm", "tk", "tn"))
def conv3d_forward(x, weight, bias, *, tm=256, tk=128, tn=128):
    """Equivalent of Conv3d(in, out, k).forward(x) for NCDHW `x`."""
    n, cin, d, h, w = x.shape
    cout = weight.shape[0]
    k = weight.shape[2]
    p = (k - 1) // 2

    a = _im2col(x.astype(jnp.float32), k, p)                 # (M, K)
    m_dim, k_dim = a.shape
    b = weight.astype(jnp.float32).reshape(cout, k_dim).T     # (K, C_out)

    m_pad = _round_up(m_dim, tm)
    k_pad = _round_up(k_dim, tk)
    n_pad = _round_up(cout, tn)

    a = jnp.pad(a, ((0, m_pad - m_dim), (0, k_pad - k_dim)))
    b = jnp.pad(b, ((0, k_pad - k_dim), (0, n_pad - cout)))
    bias2d = jnp.pad(bias.astype(jnp.float32),
                     (0, n_pad - cout)).reshape(1, n_pad)

    out = _matmul_bias(a, b, bias2d, tm=tm, tk=tk, tn=tn)     # (Mpad, Npad)

    out = out[:m_dim, :cout].reshape(n, d, h, w, cout)
    return jnp.transpose(out, (0, 4, 1, 2, 3)).astype(x.dtype)


class Conv3d:
    """JAX/Pallas mirror of the PyTorch module (stride 1, 'same' padding)."""

    def __init__(self, in_chans, out_chans, kernel_size, *, key):
        k = kernel_size
        fan_in = in_chans * k ** 3
        bound = 1.0 / (fan_in ** 0.5)          # PyTorch default init range
        wkey, bkey = jax.random.split(key)
        self.weight = jax.random.uniform(
            wkey, (out_chans, in_chans, k, k, k), jnp.float32, -bound, bound)
        self.bias = jax.random.uniform(
            bkey, (out_chans,), jnp.float32, -bound, bound)

    def __call__(self, x):
        return conv3d_forward(x, self.weight, self.bias)


# ----------------------------------------------------------------------------
# Reference (pure JAX/XLA) conv for correctness check.
# ----------------------------------------------------------------------------
def _reference_conv3d(x, weight, bias):
    k = weight.shape[2]
    p = (k - 1) // 2
    out = jax.lax.conv_general_dilated(
        x.astype(jnp.float32), weight.astype(jnp.float32),
        window_strides=(1, 1, 1),
        padding=[(p, p)] * 3,
        dimension_numbers=("NCDHW", "OIDHW", "NCDHW"),
        precision=jax.lax.Precision.HIGHEST)
    return out + bias[None, :, None, None, None]


if __name__ == "__main__":
    key = jax.random.PRNGKey(0)
    kx1, kx2, km1, km2 = jax.random.split(key, 4)

    # Config 1: batch=2, in_chans=4, out_chans=8, (D,H,W)=(6,8,10), kernel=3
    x1 = jax.random.normal(kx1, (2, 4, 6, 8, 10), dtype=jnp.float32)
    conv1 = Conv3d(4, 8, 3, key=km1)
    y1 = jax.block_until_ready(conv1(x1))
    ref1 = _reference_conv3d(x1, conv1.weight, conv1.bias)
    assert y1.shape == ref1.shape, (y1.shape, ref1.shape)
    assert jnp.allclose(y1, ref1, atol=1e-4, rtol=1e-3), \
        float(jnp.max(jnp.abs(y1 - ref1)))

    # Config 2: odd channel counts + kernel_size=5 (exercises K-reduction loop
    # with multiple tk steps and channel padding to 128 lanes).
    x2 = jax.random.normal(kx2, (1, 3, 8, 8, 8), dtype=jnp.float32)
    conv2 = Conv3d(3, 5, 5, key=km2)
    y2 = jax.block_until_ready(conv2(x2))
    ref2 = _reference_conv3d(x2, conv2.weight, conv2.bias)
    assert y2.shape == ref2.shape, (y2.shape, ref2.shape)
    assert jnp.allclose(y2, ref2, atol=1e-4, rtol=1e-3), \
        float(jnp.max(jnp.abs(y2 - ref2)))

    print("KERNEL_OK")
</pallas_src>

<mosaic_0001>
module attributes {stable_mosaic.version = 11 : i64} {
  func.func @_matmul_bias_kernel(%arg0: i32, %arg1: i32, %arg2: i32, %arg3: memref<256x128xf32, #tpu.memory_space<vmem>>, %arg4: memref<128x128xf32, #tpu.memory_space<vmem>>, %arg5: memref<1x128xf32, #tpu.memory_space<vmem>>, %arg6: memref<256x128xf32, #tpu.memory_space<vmem>>, %arg7: memref<256x128xf32, #tpu.memory_space<vmem>>) attributes {dimension_semantics = [#tpu.dimension_semantics<parallel>, #tpu.dimension_semantics<parallel>, #tpu.dimension_semantics<arbitrary>], iteration_bounds = array<i64: 4, 1, 1>, scalar_prefetch = 0 : i64, scratch_operands = 1 : i64, tpu.core_type = #tpu.core_type<tc>, window_params = [{transform_indices = @transform_0, window_bounds = array<i64: 256, 128>}, {transform_indices = @transform_1, window_bounds = array<i64: 128, 128>}, {transform_indices = @transform_2, window_bounds = array<i64: 1, 128>}, {transform_indices = @transform_3, window_bounds = array<i64: 256, 128>}]} {
    %c0_i32 = arith.constant 0 : i32
    %0 = arith.cmpi eq, %arg2, %c0_i32 : i32
    %1 = arith.extui %0 : i1 to i32
    %c0_i32_0 = arith.constant 0 : i32
    %2 = arith.cmpi ne, %1, %c0_i32_0 : i32
    scf.if %2 {
      %cst_10 = arith.constant 0.000000e+00 : f32
      %12 = vector.broadcast %cst_10 : f32 to vector<256x128xf32>
      %c0_11 = arith.constant 0 : index
      %c0_12 = arith.constant 0 : index
      %13 = vector.load %arg7[%c0_11, %c0_12] : memref<256x128xf32, #tpu.memory_space<vmem>>, vector<256x128xf32>
      tpu.vector_store %arg7[%c0_11, %c0_12], %12 {strides = array<i32>} : memref<256x128xf32, #tpu.memory_space<vmem>>, vector<256x128xf32>,
    } else {
    }
    %c0 = arith.constant 0 : index
    %c0_1 = arith.constant 0 : index
    %3 = vector.load %arg7[%c0, %c0_1] : memref<256x128xf32, #tpu.memory_space<vmem>>, vector<256x128xf32>
    %c0_2 = arith.constant 0 : index
    %c0_3 = arith.constant 0 : index
    %4 = vector.load %arg3[%c0_2, %c0_3] : memref<256x128xf32, #tpu.memory_space<vmem>>, vector<256x128xf32>
    %c0_4 = arith.constant 0 : index
    %c0_5 = arith.constant 0 : index
    %5 = vector.load %arg4[%c0_4, %c0_5] : memref<128x128xf32, #tpu.memory_space<vmem>>, vector<128x128xf32>
    %cst = arith.constant dense<0.000000e+00> : vector<256x128xf32>
    %6 = tpu.matmul %4, %5, %cst {dimension_numbers = #tpu.dot_dimension_numbers<[1], [0], [0], [1], [0, 0, 1, 1], [], []>, precision = #tpu.contract_precision<fp32>} : vector<256x128xf32>, vector<128x128xf32>, vector<256x128xf32> -> vector<256x128xf32>
    %7 = arith.addf %3, %6 : vector<256x128xf32>
    %c0_6 = arith.constant 0 : index
    %c0_7 = arith.constant 0 : index
    %8 = vector.load %arg7[%c0_6, %c0_7] : memref<256x128xf32, #tpu.memory_space<vmem>>, vector<256x128xf32>
    tpu.vector_store %arg7[%c0_6, %c0_7], %7 {strides = array<i32>} : memref<256x128xf32, #tpu.memory_space<vmem>>, vector<256x128xf32>,
    %c0_i32_8 = arith.constant 0 : i32
    %9 = arith.cmpi eq, %arg2, %c0_i32_8 : i32
    %10 = arith.extui %9 : i1 to i32
    %c0_i32_9 = arith.constant 0 : i32
    %11 = arith.cmpi ne, %10, %c0_i32_9 : i32
    scf.if %11 {
      %c0_10 = arith.constant 0 : index
      %c0_11 = arith.constant 0 : index
      %12 = vector.load %arg7[%c0_10, %c0_11] : memref<256x128xf32, #tpu.memory_space<vmem>>, vector<256x128xf32>
      %c0_12 = arith.constant 0 : index
      %c0_13 = arith.constant 0 : index
      %13 = vector.load %arg5[%c0_12, %c0_13] : memref<1x128xf32, #tpu.memory_space<vmem>>, vector<1x128xf32>
      %14 = vector.broadcast %13 : vector<1x128xf32> to vector<256x128xf32>
      %15 = arith.addf %12, %14 : vector<256x128xf32>
      %c0_14 = arith.constant 0 : index
      %c0_15 = arith.constant 0 : index
      %16 = vector.load %arg6[%c0_14, %c0_15] : memref<256x128xf32, #tpu.memory_space<vmem>>, vector<256x128xf32>
      tpu.vector_store %arg6[%c0_14, %c0_15], %15 {strides = array<i32>} : memref<256x128xf32, #tpu.memory_space<vmem>>, vector<256x128xf32>,
    } else {
    }
    return
  }
  func.func @transform_0(%arg0: i32, %arg1: i32, %arg2: i32) -> (i32, i32) {
    %c0_i32 = arith.constant 0 : i32
    return %arg0, %arg2 : i32, i32
  }
  func.func @transform_1(%arg0: i32, %arg1: i32, %arg2: i32) -> (i32, i32) {
    %c0_i32 = arith.constant 0 : i32
    return %arg2, %arg1 : i32, i32
  }
  func.func @transform_2(%arg0: i32, %arg1: i32, %arg2: i32) -> (i32, i32) {
    %c0_i32 = arith.constant 0 : i32
    %c0_i32_0 = arith.constant 0 : i32
    return %c0_i32, %arg1 : i32, i32
  }
  func.func @transform_3(%arg0: i32, %arg1: i32, %arg2: i32) -> (i32, i32) {
    %c0_i32 = arith.constant 0 : i32
    return %arg0, %arg1 : i32, i32
  }
}

</mosaic_0001>

<bundles_post_ra>
// kernel: conv3d_forward.1
= control target key start
LH: loop header
LB: loop body
LE: loop exit
PB: predicated region body
PF: predicated region fallthrough
CT: control target
= control target key end

     0   :  { %s3832_s12 = smov 0   ;;  %s3834_s13 = smov 0   ;;  %s4794_s0 = inlined_call_operand.vmem [shape: f32[1024,128], index: 0, kind: input, shape index: {}]   ;;  %s4795_s1 = inlined_call_operand.vmem [shape: f32[128,128], index: 1, kind: input, shape index: {}]   ;;  %s4796_s2 = inlined_call_operand.vmem [shape: f32[1,128], index: 2, kind: input, shape index: {}]   ;;  %s4797_s3 = inlined_call_operand.vmem [shape: f32[1024,128], index: 3, kind: output, shape index: {}]  }
   0x1   :  { %s3836_s14 = smov 0  }
   0x2 LB: > { %s32_s15 = sadd.s32 1, %s3806_s13  ;;  %p2636_p0 = scmp.ge.s32.totalorder %s3810_s14, 1  ;;  %s3810_s14 = sphi %s3836_s14, %s13_s14   ;;  %s3806_s13 = sphi %s3834_s13, %s4983_s13   ;;  %s3802_s12 = sphi %s3832_s12, %s4982_s12  }
   0x3   : > { %p34_p1 = scmp.ge.s32.totalorder %s32_s15, 4  ;;  %p188_p2 = scmp.lt.s32.totalorder %s3810_s14, 5 }
   0x5   : > { %s4985_s15 = smov (%p34_p1, %s32_s15), 0  ;;  %p189_p3 = pnand %p2636_p0, %p188_p2 }
   0x7   : > { %192 = sbr.rel (%p189_p3) target bundleno = 462 (0x1ce), region = 32 }
   0xe   : > { %v359_v0 = vld [vmem:[%s4795_s1] sm:$0xff]  ;;  %v360_v1 = vld [vmem:[%s4795_s1 + $0x8] sm:$0xff]  ;;  %v3861_v2 = vld [vmem:[%s4795_s1 + $0x10] sm:$0xff]  ;;  %s2637_s22 = sshll.u32 %s3802_s12, 5 }
   0xf   : > { %v376_v3 = vand.u32 4294901760, %v359_v0  ;;  %v379_v4 = vand.u32 4294901760, %v360_v1  ;;  %v3867_v5 = vld [vmem:[%s4795_s1 + $0x18] sm:$0xff]  ;;  %v382_v6 = vand.u32 4294901760, %v3861_v2  ;;  %v3873_v7 = vld [vmem:[%s4795_s1 + $0x20] sm:$0xff]  ;;  %v3878_v8 = vld [vmem:[%s4795_s1 + $0x28] sm:$0xff] }
  0x10   : > { %v385_v9 = vand.u32 4294901760, %v3867_v5  ;;  %v388_v11 = vand.u32 4294901760, %v3873_v7  ;;  %v391_v12 = vand.u32 4294901760, %v3878_v8  ;;  %v3894_v14 = vld [vmem:[%s4795_s1 + $0x30] sm:$0xff]  ;;  %v3899_v15 = vld [vmem:[%s4795_s1 + $0x38] sm:$0xff]  ;;  %p230_p4 = scmp.lt.s32.totalorder %s2637_s22, 127 }
  0x11   : > { %v3881_v10 = vpack.c.bf16 %v379_v4, %v376_v3  ;;  %v394_v17 = vand.u32 4294901760, %v3894_v14  ;;  %v397_v18 = vand.u32 4294901760, %v3899_v15  ;;  %v3920_v19 = vld [vmem:[%s4795_s1 + $0x40] sm:$0xff]  ;;  %v3925_v20 = vld [vmem:[%s4795_s1 + $0x48] sm:$0xff]  ;;  %v3954_v27 = vld [vmem:[%s4795_s1 + $0x50] sm:$0xff]  ;;  %v3961_v29 = vsub.f32 %v359_v0, %v376_v3 }
  0x12   : > { %v3889_v13 = vpack.c.bf16 %v385_v9, %v382_v6  ;;  %s4987_s22 = smov (!%p230_p4, %s2637_s22), 127  ;;  %v3913_v16 = vpack.c.bf16 %v391_v12, %v388_v11  ;;  %v4806_v23 = vand.u32 4294901760, %v3920_v19  ;;  %v4804_v24 = vand.u32 4294901760, %v3925_v20  ;;  %v3959_v28 = vld [vmem:[%s4795_s1 + $0x58] sm:$0xff]  ;;  %v3988_v39 = vld [vmem:[%s4795_s1 + $0x60] sm:$0xff]  ;;  %v3993_v40 = vld [vmem:[%s4795_s1 + $0x68] sm:$0xff] }
  0x13   : > { %3413 = vmatprep.subr.bf16.mxu1 %v3881_v10  ;;  %3509 = vmatprep.subr.bf16.mxu0 %v3881_v10  ;;  %s2638_s10 = sshll.u32 %s4987_s22, 3  ;;  %v3944_v22 = vpack.c.bf16 %v397_v18, %v394_v17  ;;  %v3963_v30 = vsub.f32 %v360_v1, %v379_v4  ;;  %v4803_v37 = vand.u32 4294901760, %v3954_v27  ;;  %v4802_v38 = vand.u32 4294901760, %v3959_v28  ;;  %v3999_v42 = vld [vmem:[%s4795_s1 + $0x70] sm:$0xff]  ;;  %v4004_v43 = vld [vmem:[%s4795_s1 + $0x78] sm:$0xff] }
  0x14   : > { %3415 = vmatpush3.bf16.msra.mxu1 %v3881_v10  ;;  %3511 = vmatpush3.bf16.msra.mxu0 %v3881_v10  ;;  %s3933_s16 = scalar_lea.vmem %s4794_s0, %s2638_s10  ;;  %v3981_v36 = vpack.c.bf16 %v4804_v24, %v4806_v23  ;;  %v779_v44 = vand.u32 4294901760, %v3961_v29  ;;  %v4801_v51 = vand.u32 4294901760, %v3988_v39  ;;  %v4800_v52 = vand.u32 4294901760, %v3993_v40  ;;  %s4719_s7 = scalar_lea.vmem %s4797_s3, %s2638_s10 }
  0x15   : > { %3417 = vmatprep.subr.bf16.mxu1 %v3889_v13  ;;  %3513 = vmatprep.subr.bf16.mxu0 %v3889_v13  ;;  %v327_v21 = vld [vmem:[%s3933_s16] sm:$0xff]  ;;  %4866 = vst [vmem:[#allocation3_spill] sm:$0xff] %v3944_v22  ;;  %v328_v26 = vld [vmem:[%s3933_s16 + $0x8] sm:$0xff]  ;;  %v329_v33 = vld [vmem:[%s3933_s16 + $0x10] sm:$0xff]  ;;  %v786_v45 = vand.u32 4294901760, %v3963_v30  ;;  %v4026_v54 = vsub.f32 %v3861_v2, %v382_v6  ;;  %v4034_v55 = vpack.c.bf16 %v4802_v38, %v4803_v37  ;;  %v4799_v56 = vand.u32 4294901760, %v3999_v42 }
  0x16   : > { %v3948_v25 = vand.u32 4294901760, %v327_v21  ;;  %v3970_v32 = vand.u32 4294901760, %v328_v26  ;;  %v330_v34 = vld [vmem:[%s3933_s16 + $0x18] sm:$0xff]  ;;  %v331_v35 = vld [vmem:[%s3933_s16 + $0x20] sm:$0xff]  ;;  %4868 = vst [vmem:[#allocation5_spill] sm:$0xff] %v3981_v36  ;;  %v4009_v47 = vand.u32 4294901760, %v329_v33  ;;  %v780_v59 = vsub.f32 %v3961_v29, %v779_v44 }
  0x17   : > { %v4011_v48 = vand.u32 4294901760, %v330_v34  ;;  %v4013_v49 = vand.u32 4294901760, %v331_v35  ;;  %v332_v50 = vld [vmem:[%s3933_s16 + $0x28] sm:$0xff]  ;;  %4870 = vst [vmem:[#allocation7_spill] sm:$0xff] %v4034_v55  ;;  %v4798_v57 = vand.u32 4294901760, %v4004_v43  ;;  %v787_v60 = vsub.f32 %v3963_v30, %v786_v45 }
  0x18   : > { %3419 = vmatpush3.bf16.msra.mxu1 %v3889_v13  ;;  %3515 = vmatpush3.bf16.msra.mxu0 %v3889_v13  ;;  %v3966_v31 = vsub.f32 %v327_v21, %v3948_v25  ;;  %v4021_v53 = vsub.f32 %v328_v26, %v3970_v32  ;;  %v4042_v61 = vand.u32 4294901760, %v332_v50  ;;  %v4047_v62 = vsub.f32 %v3867_v5, %v385_v9  ;;  %v333_v5 = vld [vmem:[%s3933_s16 + $0x30] sm:$0xff]  ;;  %v334_v9 = vld [vmem:[%s3933_s16 + $0x38] sm:$0xff] }
  0x19   : > { %3421 = vmatprep.subr.bf16.mxu1 %v3913_v16  ;;  %3517 = vmatprep.subr.bf16.mxu0 %v3913_v16  ;;  %v4050_v63 = vsub.f32 %v329_v33, %v4009_v47  ;;  %v4053_v0 = vsub.f32 %v330_v34, %v4011_v48  ;;  %v4056_v1 = vsub.f32 %v331_v35, %v4013_v49  ;;  %v4807_v4 = vand.u32 4294901760, %v4026_v54 }
  0x1a   : > { %4867 = vst [vmem:[#allocation4_spill] sm:$0xff] %v3966_v31  ;;  %v458_v41 = vand.u32 4294901760, %v3966_v31  ;;  %4869 = vst [vmem:[#allocation6_spill] sm:$0xff] %v4021_v53  ;;  %v4064_v2 = vpack.c.bf16 %v4800_v52, %v4801_v51  ;;  %v4805_v3 = vand.u32 4294901760, %v4021_v53  ;;  %v4075_v6 = vpack.c.bf16 %v4798_v57, %v4799_v56  ;;  %v336_v56 = vld [vmem:[%s3933_s16 + $0x48] sm:$0xff] }
  0x1b   : > { %4871 = vst [vmem:[#allocation8_spill] sm:$0xff] %v4042_v61  ;;  %4872 = vst [vmem:[#allocation9_spill] sm:$0xff] %v4050_v63  ;;  %v4081_v21 = vsub.f32 %v3873_v7, %v388_v11  ;;  %v4086_v26 = vsub.f32 %v3878_v8, %v391_v12  ;;  %v781_v33 = vand.u32 4294901760, %v780_v59  ;;  %v788_v34 = vand.u32 4294901760, %v787_v60 }
  0x1c   : > { %3423 = vmatpush3.bf16.msra.mxu1 %v3913_v16  ;;  %3519 = vmatpush3.bf16.msra.mxu0 %v3913_v16  ;;  %v459_v46 = vsub.f32 %v3966_v31, %v458_v41  ;;  %4873 = vst [vmem:[#allocation10_spill] sm:$0xff] %v4053_v0  ;;  %4874 = vst [vmem:[#allocation11_spill] sm:$0xff] %v4056_v1  ;;  %v4089_v35 = vsub.f32 %v332_v50, %v4042_v61  ;;  %v4808_v57 = vand.u32 4294901760, %v4053_v0 }
  0x1d   : > { %3425 = vmatprep.subr.bf16.mxu1 %v3944_v22  ;;  %3521 = vmatprep.subr.bf16.mxu0 %v3944_v22  ;;  %4875 = vst [vmem:[#allocation12_spill] sm:$0xff] %v4064_v2  ;;  %4876 = vst [vmem:[#allocation13_spill] sm:$0xff] %v4075_v6  ;;  %v4809_v7 = vand.u32 4294901760, %v4056_v1  ;;  %v4096_v11 = vand.u32 4294901760, %v333_v5  ;;  %v469_v8 = vsub.f32 %v4021_v53, %v4805_v3  ;;  %v4106_v50 = vand.u32 4294901760, %v334_v9  ;;  %v337_v3 = vld [vmem:[%s3933_s16 + $0x50] sm:$0xff] }
  0x1e   : > { %3204 = vmatprep.mubr.f32.mxu0 %v458_v41  ;;  %v460_v58 = vand.u32 4294901760, %v459_v46  ;;  %4877 = vst [vmem:[#allocation14_spill] sm:$0xff] %v4089_v35  ;;  %v800_v41 = vand.u32 4294901760, %v4047_v62  ;;  %v335_v46 = vld [vmem:[%s3933_s16 + $0x40] sm:$0xff]  ;;  %v794_v12 = vsub.f32 %v4026_v54, %v4807_v4  ;;  %v4111_v59 = vsub.f32 %v3894_v14, %v394_v17 }
  0x1f   : > { %4878 = vst [vmem:[#allocation15_spill] sm:$0xff] %v4096_v11  ;;  %4879 = vst [vmem:[#allocation16_spill] sm:$0xff] %v4106_v50  ;;  %v4115_v60 = vand.u32 4294901760, %v335_v46  ;;  %v807_v52 = vand.u32 4294901760, %v4081_v21  ;;  %v814_v51 = vand.u32 4294901760, %v4086_v26  ;;  %v4123_v38 = vsub.f32 %v3899_v15, %v397_v18 }
  0x20   : > { %3427 = vmatpush3.bf16.msra.mxu1 %v3944_v22  ;;  %3523 = vmatpush3.bf16.msra.mxu0 %v3944_v22  ;;  %v3444_v37 = vpack.c.bf16 %v788_v34, %v781_v33  ;;  %v3540_v14 = vpack.c.bf16 %v786_v45, %v779_v44  ;;  %v4820_v17 = vand.u32 4294901760, %v4089_v35  ;;  %v801_v24 = vsub.f32 %v4047_v62, %v800_v41 }
  0x21   : > { %3429 = vmatprep.subr.bf16.mxu1 %v3981_v36  ;;  %3525 = vmatprep.subr.bf16.mxu0 %v3981_v36  ;;  %4880 = vst [vmem:[#allocation17_spill] sm:$0xff] %v4115_v60  ;;  %v4136_v4 = vsub.f32 %v4053_v0, %v4808_v57  ;;  %v4141_v15 = vsub.f32 %v4056_v1, %v4809_v7  ;;  %v470_v44 = vand.u32 4294901760, %v469_v8  ;;  %v795_v45 = vand.u32 4294901760, %v794_v12  ;;  %v338_v57 = vld [vmem:[%s3933_s16 + $0x58] sm:$0xff] }
  0x22   : > { %2964 = vmatprep.mubr.f32.mxu1 %v460_v58  ;;  %v4810_v58 = vand.u32 4294901760, %v4050_v63  ;;  %v4144_v18 = vsub.f32 %v333_v5, %v4096_v11  ;;  %v4149_v33 = vsub.f32 %v334_v9, %v4106_v50  ;;  %v4151_v34 = vand.u32 4294901760, %v336_v56 }
  0x23   : > { %v4157_v7 = vsub.f32 %v335_v46, %v4115_v60  ;;  %v808_v5 = vsub.f32 %v4081_v21, %v807_v52  ;;  %v4161_v8 = vand.u32 4294901760, %v337_v3  ;;  %v4166_v9 = vsub.f32 %v4089_v35, %v4820_v17 }
  0x24   : > { %3431 = vmatpush3.bf16.msra.mxu1 %v3981_v36  ;;  %3527 = vmatpush3.bf16.msra.mxu0 %v3981_v36  ;;  %v479_v23 = vsub.f32 %v4050_v63, %v4810_v58  ;;  %4881 = vst [vmem:[#allocation18_spill] sm:$0xff] %v4144_v18  ;;  %4882 = vst [vmem:[#allocation19_spill] sm:$0xff] %v4149_v33  ;;  %v815_v58 = vsub.f32 %v4086_v26, %v814_v51  ;;  %v802_v12 = vand.u32 4294901760, %v801_v24 }
  0x25   : > { %3433 = vmatprep.subr.bf16.mxu1 %v4034_v55  ;;  %3529 = vmatprep.subr.bf16.mxu0 %v4034_v55  ;;  %4883 = vst [vmem:[#allocation20_spill] sm:$0xff] %v4151_v34  ;;  %4884 = vst [vmem:[#allocation21_spill] sm:$0xff] %v4157_v7  ;;  %v490_v46 = vand.u32 4294901760, %v4136_v4  ;;  %v4172_v60 = vand.u32 4294901760, %v338_v57  ;;  %v500_v17 = vand.u32 4294901760, %v4141_v15  ;;  %v4885_v24 = vand.u32 4294901760, %v4026_v54 }
  0x26   : > { %v339_v4 = vld [vmem:[%s3933_s16 + $0x60] sm:$0xff]  ;;  %v4833_v36 = vand.u32 4294901760, %v4157_v7  ;;  %v816_v22 = vand.u32 4294901760, %v815_v58  ;;  %v4186_v11 = vsub.f32 %v337_v3, %v4161_v8  ;;  %v340_v15 = vld [vmem:[%s3933_s16 + $0x68] sm:$0xff]  ;;  %v4888_v61 = vand.u32 4294901760, %v4111_v59 }
  0x27   : > { %v3544_v50 = vpack.c.bf16 %v800_v41, %v4885_v24  ;;  %v4889_v24 = vand.u32 4294901760, %v4123_v38  ;;  %v4890_v31 = vand.u32 4294901760, %v3920_v19  ;;  %v4891_v58 = vand.u32 4294901760, %v4021_v53 }
  0x28   : > { %3435 = vmatpush3.bf16.msra.mxu1 %v4034_v55  ;;  %3531 = vmatpush3.bf16.msra.mxu0 %v4034_v55  ;;  %v480_v55 = vand.u32 4294901760, %v479_v23  ;;  %v4181_v23 = vsub.f32 %v336_v56, %v4151_v34  ;;  %4887 = vst [vmem:[#allocation23_spill] sm:$0xff] %v4186_v11  ;;  %v822_v41 = vsub.f32 %v4111_v59, %v4888_v61  ;;  %v4892_v3 = vand.u32 4294901760, %v4144_v18 }
  0x29   : > { %3437 = vmatprep.subr.bf16.mxu1 %v4064_v2  ;;  %3533 = vmatprep.subr.bf16.mxu0 %v4064_v2  ;;  %v829_v56 = vsub.f32 %v4123_v38, %v4889_v24  ;;  %v4198_v34 = vsub.f32 %v3920_v19, %v4890_v31  ;;  %v4208_v61 = vsub.f32 %v338_v57, %v4172_v60  ;;  %v4895_v19 = vand.u32 4294901760, %v4149_v33 }
  0x2a   : > { %4886 = vst [vmem:[#allocation22_spill] sm:$0xff] %v4181_v23 }
  0x2b   : > { %4893 = vst [vmem:[#allocation24_spill] sm:$0xff] %v4208_v61  ;;  %v4215_v31 = vsub.f32 %v4149_v33, %v4895_v19  ;;  %v4834_v24 = vand.u32 4294901760, %v4198_v34  ;;  %v341_v19 = vld [vmem:[%s3933_s16 + $0x70] sm:$0xff] }
  0x2c   : > { %3439 = vmatpush3.bf16.msra.mxu1 %v4064_v2  ;;  %3535 = vmatpush3.bf16.msra.mxu0 %v4064_v2  ;;  %v809_v2 = vand.u32 4294901760, %v808_v5  ;;  %v4205_v5 = vpack.c.bf16 %v814_v51, %v807_v52  ;;  %v4897_v52 = vand.u32 4294901760, %v4050_v63  ;;  %v344_v63 = vld [vmem:[%s3933_s16 + $0x88] sm:$0xff] }
  0x2d   : > { %3441 = vmatprep.subr.bf16.mxu1 %v4075_v6  ;;  %3537 = vmatprep.subr.bf16.mxu0 %v4075_v6 }
  0x2e   : > { %v3452_v57 = vpack.c.bf16 %v816_v22, %v809_v2  ;;  %v510_v22 = vand.u32 4294901760, %v4166_v9  ;;  %v4254_v9 = vand.u32 4294901760, %v341_v19 }
  0x30   : > { %3443 = vmatpush3.bf16.msra.mxu1 %v4075_v6  ;;  %3539 = vmatpush3.bf16.msra.mxu0 %v4075_v6  ;;  %v3448_v6 = vpack.c.bf16 %v802_v12, %v795_v45  ;;  %v519_v45 = vsub.f32 %v4144_v18, %v4892_v3  ;;  %v4210_v12 = vand.u32 4294901760, %v339_v4  ;;  %v4232_v3 = vand.u32 4294901760, %v340_v15 }
  0x31   : > { %3445 = vmatprep.subr.bf16.mxu1 %v3444_v37  ;;  %3541 = vmatprep.subr.bf16.mxu0 %v3540_v14 }
  0x32   : > { %4894 = vst [vmem:[#allocation25_spill] sm:$0xff] %v4210_v12  ;;  %4898 = vst [vmem:[#allocation26_spill] sm:$0xff] %v4232_v3  ;;  %v520_v2 = vand.u32 4294901760, %v519_v45 }
  0x33   : > { %2965 = vmatmul.mubr.f32.vlgmr.msra.gmra.mrb[0].mxu1 %v470_v44  ;;  %3205 = vmatmul.mubr.f32.vlgmr.msra.gmra.mrb[0].mxu0 %v4891_v58  ;;  %v4835_v44 = vand.u32 4294901760, %v4181_v23  ;;  %v4896_v58 = vand.u32 4294901760, %v3925_v20 }
  0x34   : > { %3447 = vmatpush3.bf16.msra.mxu1 %v3444_v37  ;;  %3543 = vmatpush3.bf16.msra.mxu0 %v3540_v14  ;;  %v4229_v37 = vsub.f32 %v4157_v7, %v4833_v36  ;;  %v4899_v36 = vand.u32 4294901760, %v4053_v0  ;;  %v4905_v14 = vand.u32 4294901760, %v4123_v38  ;;  %v343_v0 = vld [vmem:[%s3933_s16 + $0x80] sm:$0xff] }
  0x35   : > { %v4222_v51 = vsub.f32 %v3925_v20, %v4896_v58  ;;  %2967 = vmatprep.mubr.f32.mxu1 %v480_v55  ;;  %3207 = vmatprep.mubr.f32.mxu0 %v4897_v52  ;;  %v823_v20 = vand.u32 4294901760, %v822_v41  ;;  %v830_v58 = vand.u32 4294901760, %v829_v56  ;;  %v836_v55 = vsub.f32 %v4198_v34, %v4834_v24 }
  0x36   : > { %3449 = vmatprep.subr.bf16.mxu1 %v3448_v6  ;;  %3545 = vmatprep.subr.bf16.mxu0 %v3544_v50  ;;  %v4244_v41 = vsub.f32 %v339_v4, %v4210_v12  ;;  %v4901_v56 = vand.u32 4294901760, %v4056_v1  ;;  %v530_v24 = vand.u32 4294901760, %v4215_v31  ;;  %v540_v4 = vand.u32 4294901760, %v4229_v37 }
  0x37   : > { %v842_v52 = vand.u32 4294901760, %v4222_v51  ;;  %2968 = vmatmul.mubr.f32.gmra.mrb[2].mxu1 %v490_v46  ;;  %3208 = vmatmul.mubr.f32.gmra.mrb[2].mxu0 %v4899_v36  ;;  %v4252_v36 = vsub.f32 %v4181_v23, %v4835_v44  ;;  %v342_v46 = vld [vmem:[%s3933_s16 + $0x78] sm:$0xff]  ;;  %v4265_v31 = vsub.f32 %v340_v15, %v4232_v3  ;;  %v4904_v44 = vand.u32 4294901760, %v4111_v59 }
  0x38   : > { %4900 = vst [vmem:[#allocation27_spill] sm:$0xff] %v4244_v41  ;;  %2970 = vmatprep.mubr.f32.mxu1 %v500_v17  ;;  %3210 = vmatprep.mubr.f32.mxu0 %v4901_v56  ;;  %v4902_v17 = vand.u32 4294901760, %v4186_v11  ;;  %v4907_v15 = vand.u32 4294901760, %v4089_v35  ;;  %v4908_v3 = vand.u32 4294901760, %v4208_v61  ;;  %v4287_v12 = vand.u32 4294901760, %v342_v46  ;;  %v346_v35 = vld [vmem:[%s3933_s16 + $0x98] sm:$0xff] }
  0x39   : > { %v843_v45 = vsub.f32 %v4222_v51, %v842_v52  ;;  %3451 = vmatpush3.bf16.msra.mxu1 %v3448_v6  ;;  %3547 = vmatpush3.bf16.msra.mxu0 %v3544_v50  ;;  %4903 = vst [vmem:[#allocation28_spill] sm:$0xff] %v4265_v31  ;;  %v3552_v1 = vpack.c.bf16 %v4905_v14, %v4904_v44  ;;  %v837_v50 = vand.u32 4294901760, %v836_v55 }
  0x3a   : > { %v4262_v56 = vsub.f32 %v4186_v11, %v4902_v17  ;;  %3453 = vmatprep.subr.bf16.mxu1 %v3452_v57  ;;  %3549 = vmatprep.subr.bf16.mxu0 %v4205_v5  ;;  %v3456_v6 = vpack.c.bf16 %v830_v58, %v823_v20  ;;  %v4906_v17 = vand.u32 4294901760, %v3954_v27  ;;  %v4284_v44 = vsub.f32 %v4208_v61, %v4908_v3  ;;  %v345_v20 = vld [vmem:[%s3933_s16 + $0x90] sm:$0xff] }
  0x3b   : > { %v844_v37 = vand.u32 4294901760, %v843_v45  ;;  %2971 = vmatmul.mubr.f32.gmra.mrb[4].mxu1 %v510_v22  ;;  %3211 = vmatmul.mubr.f32.gmra.mrb[4].mxu0 %v4907_v15  ;;  %v4909_v58 = vand.u32 4294901760, %v3959_v28  ;;  %v4298_v22 = vsub.f32 %v341_v19, %v4254_v9  ;;  %v4300_v3 = vand.u32 4294901760, %v343_v0 }
  0x3c   : > { %v4277_v53 = vsub.f32 %v3954_v27, %v4906_v17  ;;  %2973 = vmatprep.mubr.f32.mxu1 %v520_v2  ;;  %v4910_v27 = vand.u32 4294901760, %v4144_v18  ;;  %v4302_v45 = vand.u32 4294901760, %v344_v63  ;;  %v550_v15 = vand.u32 4294901760, %v4252_v36 }
  0x3d   : > { %v4293_v55 = vsub.f32 %v3959_v28, %v4909_v58  ;;  %4911 = vst [vmem:[#allocation29_spill] sm:$0xff] %v4298_v22  ;;  %3455 = vmatpush3.bf16.msra.mxu1 %v3452_v57  ;;  %3551 = vmatpush3.bf16.msra.mxu0 %v4205_v5  ;;  %v560_v28 = vand.u32 4294901760, %v4262_v56  ;;  %v3460_v19 = vpack.c.bf16 %v844_v37, %v837_v50  ;;  %v4312_v18 = vand.u32 4294901760, %v345_v20  ;;  %v347_v37 = vld [vmem:[%s3933_s16 + $0xa0] sm:$0xff] }
  0x3e   : > { %3213 = vmatprep.mubr.f32.mxu0 %v4910_v27  ;;  %4912 = vst [vmem:[#allocation30_spill] sm:$0xff] %v4302_v45  ;;  %v849_v17 = vand.u32 4294901760, %v4277_v53  ;;  %3457 = vmatprep.subr.bf16.mxu1 %v3456_v6  ;;  %v4913_v27 = vand.u32 4294901760, %v4198_v34  ;;  %v4915_v5 = vand.u32 4294901760, %v4149_v33  ;;  %v570_v36 = vand.u32 4294901760, %v4284_v44 }
  0x3f   : > { %v856_v58 = vand.u32 4294901760, %v4293_v55  ;;  %3553 = vmatprep.subr.bf16.mxu0 %v3552_v1  ;;  %4914 = vst [vmem:[#allocation31_spill] sm:$0xff] %v4312_v18  ;;  %2974 = vmatmul.mubr.f32.gmra.mrb[6].mxu1 %v530_v24  ;;  %v4916_v56 = vand.u32 4294901760, %v4244_v41  ;;  %v4323_v50 = vsub.f32 %v342_v46, %v4287_v12  ;;  %v4334_v44 = vsub.f32 %v344_v63, %v4302_v45 }
  0x40   : > { %v3556_v14 = vpack.c.bf16 %v842_v52, %v4913_v27  ;;  %v850_v57 = vsub.f32 %v4277_v53, %v849_v17  ;;  %3214 = vmatmul.mubr.f32.gmra.mrb[6].mxu0 %v4915_v5  ;;  %2976 = vmatprep.mubr.f32.mxu1 %v540_v4  ;;  %v4917_v27 = vand.u32 4294901760, %v4157_v7  ;;  %v4331_v5 = vsub.f32 %v343_v0, %v4300_v3 }
  0x41   : > { %v579_v2 = vsub.f32 %v4244_v41, %v4916_v56  ;;  %v857_v52 = vsub.f32 %v4293_v55, %v856_v58  ;;  %v4918_v46 = vand.u32 4294901760, %v4265_v31  ;;  %3459 = vmatpush3.bf16.msra.mxu1 %v3456_v6  ;;  %3555 = vmatpush3.bf16.msra.mxu0 %v3552_v1  ;;  %v4339_v4 = vand.u32 4294901760, %v346_v35 }
  0x42   : > { %3216 = vmatprep.mubr.f32.mxu0 %v4917_v27  ;;  %v851_v56 = vand.u32 4294901760, %v850_v57  ;;  %v4919_v27 = vand.u32 4294901760, %v3988_v39  ;;  %3461 = vmatprep.subr.bf16.mxu1 %v3460_v19  ;;  %v4347_v63 = vsub.f32 %v345_v20, %v4312_v18  ;;  %v4349_v0 = vand.u32 4294901760, %v347_v37  ;;  %v348_v57 = vld [vmem:[%s3933_s16 + $0xa8] sm:$0xff] }
  0x43   : > { %v589_v33 = vsub.f32 %v4265_v31, %v4918_v46  ;;  %v858_v7 = vand.u32 4294901760, %v857_v52  ;;  %3557 = vmatprep.subr.bf16.mxu0 %v3556_v14  ;;  %v3560_v46 = vpack.c.bf16 %v856_v58, %v849_v17  ;;  %v4921_v1 = vand.u32 4294901760, %v3993_v40  ;;  %2977 = vmatmul.mubr.f32.gmra.mrb[8].mxu1 %v550_v15 }
  0x44   : > { %v4344_v24 = vsub.f32 %v3988_v39, %v4919_v27  ;;  %4920 = vst [vmem:[#allocation32_spill] sm:$0xff] %v4349_v0  ;;  %v4922_v52 = vand.u32 4294901760, %v4181_v23  ;;  %v580_v39 = vand.u32 4294901760, %v579_v2  ;;  %v4856_v27 = vand.u32 4294901760, %v4323_v50  ;;  %2979 = vmatprep.mubr.f32.mxu1 %v560_v28 }
  0x45   : > { %v4355_v6 = vsub.f32 %v3993_v40, %v4921_v1  ;;  %v3464_v45 = vpack.c.bf16 %v858_v7, %v851_v56  ;;  %v4923_v18 = vand.u32 4294901760, %v4186_v11  ;;  %v4924_v17 = vand.u32 4294901760, %v4298_v22  ;;  %v349_v1 = vld [vmem:[%s3933_s16 + $0xb0] sm:$0xff]  ;;  %3463 = vmatpush3.bf16.msra.mxu1 %v3460_v19  ;;  %3559 = vmatpush3.bf16.msra.mxu0 %v3556_v14 }
  0x46   : > { %3217 = vmatmul.mubr.f32.gmra.mrb[8].mxu0 %v4922_v52  ;;  %v863_v20 = vand.u32 4294901760, %v4344_v24  ;;  %v4371_v7 = vsub.f32 %v346_v35, %v4339_v4  ;;  %v4373_v28 = vand.u32 4294901760, %v348_v57  ;;  %v4378_v52 = vsub.f32 %v347_v37, %v4349_v0  ;;  %3561 = vmatprep.subr.bf16.mxu0 %v3560_v46 }
  0x47   : > { %3219 = vmatprep.mubr.f32.mxu0 %v4923_v18  ;;  %v599_v40 = vsub.f32 %v4298_v22, %v4924_v17  ;;  %v870_v2 = vand.u32 4294901760, %v4355_v6  ;;  %3465 = vmatprep.subr.bf16.mxu1 %v3464_v45  ;;  %v350_v17 = vld [vmem:[%s3933_s16 + $0xb8] sm:$0xff]  ;;  %v4925_v35 = vand.u32 4294901760, %v4208_v61  ;;  %v590_v14 = vand.u32 4294901760, %v589_v33 }
  0x48   : > { %v864_v18 = vsub.f32 %v4344_v24, %v863_v20  ;;  %2980 = vmatmul.mubr.f32.gmra.mrb[10].mxu1 %v570_v36  ;;  %v609_v15 = vsub.f32 %v4323_v50, %v4856_v27  ;;  %v4387_v56 = vand.u32 4294901760, %v349_v1  ;;  %v4926_v11 = vand.u32 4294901760, %v4244_v41  ;;  %v352_v41 = vld [vmem:[%s3933_s16 + $0xc8] sm:$0xff] }
  0x49   : > { %v871_v58 = vsub.f32 %v4355_v6, %v870_v2  ;;  %v3564_v19 = vpack.c.bf16 %v870_v2, %v863_v20  ;;  %2982 = vmatprep.mubr.f32.mxu1 %v580_v39  ;;  %v600_v23 = vand.u32 4294901760, %v599_v40  ;;  %v4927_v0 = vand.u32 4294901760, %v4331_v5  ;;  %v351_v2 = vld [vmem:[%s3933_s16 + $0xc0] sm:$0xff]  ;;  %3467 = vmatpush3.bf16.msra.mxu1 %v3464_v45 }
  0x4a   : > { %3220 = vmatmul.mubr.f32.gmra.mrb[10].mxu0 %v4925_v35  ;;  %v865_v37 = vand.u32 4294901760, %v864_v18  ;;  %v4928_v20 = vand.u32 4294901760, %v4334_v44  ;;  %v4400_v61 = vsub.f32 %v348_v57, %v4373_v28  ;;  %v4402_v39 = vand.u32 4294901760, %v350_v17 }
  0x4b   : > { %3222 = vmatprep.mubr.f32.mxu0 %v4926_v11  ;;  %v619_v36 = vsub.f32 %v4331_v5, %v4927_v0  ;;  %v872_v35 = vand.u32 4294901760, %v871_v58  ;;  %3563 = vmatpush3.bf16.msra.mxu0 %v3560_v46  ;;  %v4930_v11 = vand.u32 4294901760, %v3999_v42  ;;  %v4931_v0 = vand.u32 4294901760, %v4347_v63 }
  0x4c   : > { %v629_v33 = vsub.f32 %v4334_v44, %v4928_v20  ;;  %4929 = vst [vmem:[#allocation33_spill] sm:$0xff] %v4402_v39  ;;  %3565 = vmatprep.subr.bf16.mxu0 %v3564_v19  ;;  %v4932_v57 = vand.u32 4294901760, %v4004_v43  ;;  %2983 = vmatmul.mubr.f32.gmra.mrb[12].mxu1 %v590_v14  ;;  %v4933_v46 = vand.u32 4294901760, %v4265_v31  ;;  %v610_v27 = vand.u32 4294901760, %v609_v15 }
  0x4d   : > { %v876_v40 = vsub.f32 %v3999_v42, %v4930_v11  ;;  %v639_v18 = vsub.f32 %v4347_v63, %v4931_v0  ;;  %v3468_v20 = vpack.c.bf16 %v872_v35, %v865_v37  ;;  %v4417_v42 = vsub.f32 %v349_v1, %v4387_v56  ;;  %2985 = vmatprep.mubr.f32.mxu1 %v600_v23 }
  0x4e   : > { %v883_v45 = vsub.f32 %v4004_v43, %v4932_v57  ;;  %3223 = vmatmul.mubr.f32.gmra.mrb[12].mxu0 %v4933_v46  ;;  %v4419_v11 = vand.u32 4294901760, %v351_v2  ;;  %v4934_v37 = vand.u32 4294901760, %v4298_v22  ;;  %v620_v35 = vand.u32 4294901760, %v619_v36  ;;  %v353_v46 = vld [vmem:[%s3933_s16 + $0xd0] sm:$0xff] }
  0x4f   : > { %v877_v0 = vand.u32 4294901760, %v876_v40  ;;  %v630_v58 = vand.u32 4294901760, %v629_v33  ;;  %v4935_v14 = vand.u32 4294901760, %v4371_v7  ;;  %v4429_v1 = vsub.f32 %v350_v17, %v4402_v39  ;;  %3469 = vmatprep.subr.bf16.mxu1 %v3468_v20  ;;  %3567 = vmatpush3.bf16.msra.mxu0 %v3564_v19 }
  0x50   : > { %3225 = vmatprep.mubr.f32.mxu0 %v4934_v37  ;;  %v884_v43 = vand.u32 4294901760, %v883_v45  ;;  %v640_v22 = vand.u32 4294901760, %v639_v18  ;;  %v4936_v36 = vand.u32 4294901760, %v4378_v52  ;;  %3471 = vmatpush3.bf16.msra.mxu1 %v3468_v20  ;;  %v678_v17 = vand.u32 4294901760, %v4417_v42 }
  0x51   : > { %v649_v57 = vsub.f32 %v4371_v7, %v4935_v14  ;;  %v878_v23 = vsub.f32 %v876_v40, %v877_v0  ;;  %2986 = vmatmul.mubr.f32.gmra.mrb[14].mxu1 %v610_v27  ;;  %v4937_v14 = vand.u32 4294901760, %v4323_v50  ;;  %v4439_v19 = vsub.f32 %v351_v2, %v4419_v11 }
  0x52   : > { %v659_v33 = vsub.f32 %v4378_v52, %v4936_v36  ;;  %v885_v37 = vsub.f32 %v883_v45, %v884_v43  ;;  %v3568_v31 = vpack.c.bf16 %v884_v43, %v877_v0  ;;  %v4441_v15 = vand.u32 4294901760, %v352_v41  ;;  %2988 = vmatprep.mubr.f32.mxu1 %v620_v35  ;;  %v354_v0 = vld [vmem:[%s3933_s16 + $0xd8] sm:$0xff] }
  0x53   : > { %3226 = vmatmul.mubr.f32.gmra.mrb[14].mxu0 %v4937_v14  ;;  %4938 = vst [vmem:[#allocation34_spill] sm:$0xff] %v4439_v19  ;;  %v879_v18 = vand.u32 4294901760, %v878_v23  ;;  %v4939_v39 = vand.u32 4294901760, %v4331_v5  ;;  %v4445_v20 = vand.u32 4294901760, %v353_v46  ;;  %v4450_v27 = vpack.c.bf16 %v4047_v62, %v4026_v54  ;;  %v355_v14 = vld [vmem:[%s3933_s16 + $0xe0] sm:$0xff] }
  0x54   : > { %v886_v43 = vand.u32 4294901760, %v885_v37  ;;  %v4454_v36 = vpack.c.bf16 %v4086_v26, %v4081_v21  ;;  %v4940_v2 = vand.u32 4294901760, %v4400_v61  ;;  %v688_v35 = vand.u32 4294901760, %v4429_v1  ;;  %3569 = vmatprep.subr.bf16.mxu0 %v3568_v31 }
  0x55   : > { %3228 = vmatprep.mubr.f32.mxu0 %v4939_v39  ;;  %v4463_v39 = vpack.c.bf16 %v4123_v38, %v4111_v59  ;;  %v4467_v54 = vpack.c.bf16 %v4222_v51, %v4198_v34  ;;  %3571 = vmatpush3.bf16.msra.mxu0 %v3568_v31  ;;  %v4471_v21 = vpack.c.bf16 %v4293_v55, %v4277_v53  ;;  %v4941_v38 = vand.u32 4294901760, %v4334_v44 }
  0x56   : > { %v669_v23 = vsub.f32 %v4400_v61, %v4940_v2  ;;  %v3472_v62 = vpack.c.bf16 %v886_v43, %v879_v18  ;;  %v4475_v26 = vpack.c.bf16 %v4355_v6, %v4344_v24  ;;  %v4477_v37 = vpack.c.bf16 %v883_v45, %v876_v40  ;;  %2989 = vmatmul.mubr.f32.gmra.mrb[16].mxu1 %v630_v58  ;;  %v356_v58 = vld [vmem:[%s3933_s16 + $0xe8] sm:$0xff]  ;;  %v357_v45 = vld [vmem:[%s3933_s16 + $0xf0] sm:$0xff] }
  0x57   : > { %3229 = vmatmul.mubr.f32.gmra.mrb[16].mxu0 %v4941_v38  ;;  %v650_v59 = vand.u32 4294901760, %v649_v57  ;;  %v679_v34 = vsub.f32 %v4417_v42, %v678_v17  ;;  %v4485_v51 = vsub.f32 %v352_v41, %v4441_v15  ;;  %v4487_v53 = vand.u32 4294901760, %v354_v0  ;;  %2991 = vmatprep.mubr.f32.mxu1 %v640_v22 }
  0x58   : > { %v4943_v31 = vand.u32 4294901760, %v4347_v63  ;;  %v660_v55 = vand.u32 4294901760, %v659_v33  ;;  %v698_v24 = vand.u32 4294901760, %v4439_v19  ;;  %v4493_v6 = vsub.f32 %v353_v46, %v4445_v20  ;;  %3473 = vmatprep.subr.bf16.mxu1 %v3472_v62  ;;  %3573 = vmatprep.subr.bf16.mxu0 %v3881_v10 }
  0x59   : > { %4942 = vst [vmem:[#allocation35_spill] sm:$0xff] %v4485_v51  ;;  %v4495_v40 = vand.u32 4294901760, %v355_v14  ;;  %v4501_v41 = vpack.c.bf16 %v3963_v30, %v3961_v29  ;;  %v670_v22 = vand.u32 4294901760, %v669_v23  ;;  %v689_v57 = vsub.f32 %v4429_v1, %v688_v35  ;;  %3475 = vmatpush3.bf16.msra.mxu1 %v3472_v62 }
  0x5a   : > { %3231 = vmatprep.mubr.f32.mxu0 %v4943_v31  ;;  %4944 = vst [vmem:[#allocation36_spill] sm:$0xff] %v4493_v6  ;;  %2992 = vmatmul.mubr.f32.gmra.mrb[18].mxu1 %v650_v59  ;;  %v4945_v46 = vand.u32 4294901760, %v4371_v7  ;;  %v680_v33 = vand.u32 4294901760, %v679_v34  ;;  %v708_v18 = vand.u32 4294901760, %v4485_v51  ;;  %v4509_v43 = vsub.f32 %v354_v0, %v4487_v53  ;;  %v358_v59 = vld [vmem:[%s3933_s16 + $0xf8] sm:$0xff] }
  0x5b   : > { %v4511_v2 = vand.u32 4294901760, %v356_v58  ;;  %2994 = vmatprep.mubr.f32.mxu1 %v660_v55  ;;  %v4946_v29 = vand.u32 4294901760, %v4378_v52  ;;  %v699_v30 = vsub.f32 %v4439_v19, %v698_v24  ;;  %v718_v23 = vand.u32 4294901760, %v4493_v6  ;;  %3477 = vmatprep.subr.bf16.mxu1 %v4501_v41 }
  0x5c   : > { %3232 = vmatmul.mubr.f32.gmra.mrb[18].mxu0 %v4945_v46  ;;  %v4518_v62 = vsub.f32 %v355_v14, %v4495_v40  ;;  %v4520_v38 = vand.u32 4294901760, %v357_v45  ;;  %v690_v0 = vand.u32 4294901760, %v689_v57  ;;  %v4947_v34 = vand.u32 4294901760, %v4400_v61 }
  0x5d   : > { %3234 = vmatprep.mubr.f32.mxu0 %v4946_v29  ;;  %v709_v31 = vsub.f32 %v4485_v51, %v708_v18  ;;  %v728_v55 = vand.u32 4294901760, %v4509_v43  ;;  %v4529_v46 = vsub.f32 %v356_v58, %v4511_v2  ;;  %v4531_v29 = vand.u32 4294901760, %v358_v59 }
  0x5e   : > { %2995 = vmatmul.mubr.f32.gmra.mrb[20].mxu1 %v670_v22  ;;  %v700_v14 = vand.u32 4294901760, %v699_v30  ;;  %v719_v57 = vsub.f32 %v4493_v6, %v718_v23  ;;  %v738_v22 = vand.u32 4294901760, %v4518_v62 }
  0x5f   : > { %2997 = vmatprep.mubr.f32.mxu1 %v680_v33  ;;  %v710_v51 = vand.u32 4294901760, %v709_v31  ;;  %v729_v58 = vsub.f32 %v4509_v43, %v728_v55  ;;  %v748_v19 = vand.u32 4294901760, %v4529_v46  ;;  %v4543_v33 = vsub.f32 %v358_v59, %v4531_v29 }
  0x60   : > { %3235 = vmatmul.mubr.f32.gmra.mrb[20].mxu0 %v4947_v34  ;;  %v4538_v34 = vsub.f32 %v357_v45, %v4520_v38  ;;  %v739_v30 = vsub.f32 %v4518_v62, %v738_v22 }
  0x61   : > { %3237 = vmatprep.mubr.f32.mxu0 %v678_v17  ;;  %v720_v17 = vand.u32 4294901760, %v719_v57  ;;  %v730_v45 = vand.u32 4294901760, %v729_v58  ;;  %v4965_v58 = vld [vmem:[#allocation6_spill] sm:$0xff] }
  0x62   : > { %2998 = vmatmul.mubr.f32.gmra.mrb[22].mxu1 %v690_v0  ;;  %v758_v6 = vand.u32 4294901760, %v4538_v34  ;;  %v768_v0 = vand.u32 4294901760, %v4543_v33  ;;  %v740_v31 = vand.u32 4294901760, %v739_v30  ;;  %v4967_v30 = vld [vmem:[#allocation10_spill] sm:$0xff] }
  0x63   : > { %3000 = vmatprep.mubr.f32.mxu1 %v700_v14 }
  0x64   : > { %3238 = vmatmul.mubr.f32.gmra.mrb[22].mxu0 %v688_v35  ;;  %v749_v35 = vsub.f32 %v4529_v46, %v748_v19  ;;  %v759_v59 = vsub.f32 %v4538_v34, %v758_v6  ;;  %v769_v14 = vsub.f32 %v4543_v33, %v768_v0 }
  0x65   : > { %3240 = vmatprep.mubr.f32.mxu0 %v698_v24 }
  0x66   : > { %3001 = vmatmul.mubr.f32.gmra.mrb[24].mxu1 %v710_v51  ;;  %v750_v24 = vand.u32 4294901760, %v749_v35  ;;  %v760_v57 = vand.u32 4294901760, %v759_v59  ;;  %v770_v51 = vand.u32 4294901760, %v769_v14  ;;  %v4969_v35 = vld [vmem:[#allocation14_spill] sm:$0xff]  ;;  %v4977_v59 = vld [vmem:[#allocation28_spill] sm:$0xff] }
  0x67   : > { %3003 = vmatprep.mubr.f32.mxu1 %v720_v17  ;;  %v4966_v17 = vld [vmem:[#allocation9_spill] sm:$0xff] }
  0x68   : > { %3241 = vmatmul.mubr.f32.gmra.mrb[24].mxu0 %v708_v18  ;;  %v4958_v18 = vld [vmem:[#allocation26_spill] sm:$0xff] }
  0x69   : > { %3243 = vmatprep.mubr.f32.mxu0 %v718_v23  ;;  %v4960_v23 = vld [vmem:[#allocation30_spill] sm:$0xff] }
  0x6a   : > { %3004 = vmatmul.mubr.f32.gmra.mrb[26].mxu1 %v730_v45  ;;  %v4968_v45 = vld [vmem:[#allocation11_spill] sm:$0xff] }
  0x6b   : > { %3006 = vmatprep.mubr.f32.mxu1 %v740_v31  ;;  %v4976_v31 = vld [vmem:[#allocation27_spill] sm:$0xff] }
  0x6c   : > { %3244 = vmatmul.mubr.f32.gmra.mrb[26].mxu0 %v728_v55  ;;  %v4962_v55 = vld [vmem:[#allocation32_spill] sm:$0xff] }
  0x6d   : > { %3246 = vmatprep.mubr.f32.mxu0 %v738_v22  ;;  %v4964_v22 = vld [vmem:[#allocation4_spill] sm:$0xff] }
  0x6e   : > { %3007 = vmatmul.mubr.f32.gmra.mrb[28].mxu1 %v750_v24  ;;  %v4978_v24 = vld [vmem:[#allocation29_spill] sm:$0xff] }
  0x6f   : > { %3009 = vmatprep.mubr.f32.mxu1 %v760_v57 }
  0x70   : > { %3247 = vmatmul.mubr.f32.gmra.mrb[28].mxu0 %v748_v19  ;;  %v4949_v19 = vld [vmem:[#allocation15_spill] sm:$0xff] }
  0x71   : > { %3249 = vmatprep.mubr.f32.mxu0 %v758_v6  ;;  %v4952_v6 = vld [vmem:[#allocation17_spill] sm:$0xff] }
  0x72   : > { %3010 = vmatmul.mubr.f32.gmra.mrb[30].mxu1 %v770_v51 }
  0x73   : > { %3044 = vmatprep.mubr.f32.mxu1 %v3948_v25 }
  0x74   : > { %3250 = vmatmul.mubr.f32.gmra.mrb[30].mxu0 %v768_v0  ;;  %v4975_v0 = vld [vmem:[#allocation24_spill] sm:$0xff] }
  0x75   : > { %3284 = vmatprep.mubr.f32.mxu0 %v3948_v25 }
  0x76   : > { %3045 = vmatmul.mubr.f32.vlgmr.msra.gmra.mrb[0].mxu1 %v3970_v32 }
  0x77   : > { %3479 = vmatpush3.bf16.msra.mxu1 %v4501_v41  ;;  %3047 = vmatprep.mubr.f32.mxu1 %v4009_v47  ;;  %v4956_v41 = vld [vmem:[#allocation25_spill] sm:$0xff] }
  0x78   : > { %3285 = vmatmul.mubr.f32.vlgmr.msra.gmra.mrb[0].mxu0 %v3970_v32  ;;  %3481 = vmatprep.subr.bf16.mxu1 %v4450_v27 }
  0x79   : > { %3575 = vmatpush3.bf16.msra.mxu0 %v3881_v10  ;;  %3287 = vmatprep.mubr.f32.mxu0 %v4009_v47  ;;  %v4948_v10 = vld [vmem:[#allocation8_spill] sm:$0xff] }
  0x7a   : > { %3577 = vmatprep.subr.bf16.mxu0 %v3889_v13  ;;  %3048 = vmatmul.mubr.f32.gmra.mrb[2].mxu1 %v4011_v48 }
  0x7b   : > { %3050 = vmatprep.mubr.f32.mxu1 %v4013_v49  ;;  %3483 = vmatpush3.bf16.msra.mxu1 %v4450_v27  ;;  %v4950_v27 = vld [vmem:[#allocation3_spill] sm:$0xff] }
  0x7c   : > { %3288 = vmatmul.mubr.f32.gmra.mrb[2].mxu0 %v4011_v48  ;;  %3485 = vmatprep.subr.bf16.mxu1 %v4454_v36 }
  0x7d   : > { %3290 = vmatprep.mubr.f32.mxu0 %v4013_v49  ;;  %3579 = vmatpush3.bf16.msra.mxu0 %v3889_v13  ;;  %v4951_v13 = vld [vmem:[#allocation16_spill] sm:$0xff] }
  0x7e   : > { %3581 = vmatprep.subr.bf16.mxu0 %v3913_v16  ;;  %3051 = vmatmul.mubr.f32.gmra.mrb[4].mxu1 %v4948_v10 }
  0x7f   : > { %3053 = vmatprep.mubr.f32.mxu1 %v4949_v19  ;;  %3487 = vmatpush3.bf16.msra.mxu1 %v4454_v36  ;;  %v4953_v36 = vld [vmem:[#allocation5_spill] sm:$0xff] }
  0x80   : > { %3291 = vmatmul.mubr.f32.gmra.mrb[4].mxu0 %v4948_v10  ;;  %3489 = vmatprep.subr.bf16.mxu1 %v4463_v39 }
  0x81   : > { %3293 = vmatprep.mubr.f32.mxu0 %v4949_v19  ;;  %3583 = vmatpush3.bf16.msra.mxu0 %v3913_v16  ;;  %v4954_v16 = vld [vmem:[#allocation20_spill] sm:$0xff] }
  0x82   : > { %3585 = vmatprep.subr.bf16.mxu0 %v4950_v27  ;;  %3054 = vmatmul.mubr.f32.gmra.mrb[6].mxu1 %v4951_v13 }
  0x83   : > { %3056 = vmatprep.mubr.f32.mxu1 %v4952_v6  ;;  %3491 = vmatpush3.bf16.msra.mxu1 %v4463_v39  ;;  %v4955_v39 = vld [vmem:[#allocation7_spill] sm:$0xff] }
  0x84   : > { %3294 = vmatmul.mubr.f32.gmra.mrb[6].mxu0 %v4951_v13  ;;  %3493 = vmatprep.subr.bf16.mxu1 %v4467_v54 }
  0x85   : > { %3296 = vmatprep.mubr.f32.mxu0 %v4952_v6  ;;  %3587 = vmatpush3.bf16.msra.mxu0 %v4950_v27 }
  0x86   : > { %3589 = vmatprep.subr.bf16.mxu0 %v4953_v36  ;;  %3057 = vmatmul.mubr.f32.gmra.mrb[8].mxu1 %v4954_v16 }
  0x87   : > { %3059 = vmatprep.mubr.f32.mxu1 %v4161_v8  ;;  %3495 = vmatpush3.bf16.msra.mxu1 %v4467_v54  ;;  %v4957_v54 = vld [vmem:[#allocation12_spill] sm:$0xff] }
  0x88   : > { %3297 = vmatmul.mubr.f32.gmra.mrb[8].mxu0 %v4954_v16  ;;  %3497 = vmatprep.subr.bf16.mxu1 %v4471_v21 }
  0x89   : > { %3299 = vmatprep.mubr.f32.mxu0 %v4161_v8  ;;  %3591 = vmatpush3.bf16.msra.mxu0 %v4953_v36 }
  0x8a   : > { %3593 = vmatprep.subr.bf16.mxu0 %v4955_v39  ;;  %3060 = vmatmul.mubr.f32.gmra.mrb[10].mxu1 %v4172_v60 }
  0x8b   : > { %3062 = vmatprep.mubr.f32.mxu1 %v4956_v41  ;;  %3499 = vmatpush3.bf16.msra.mxu1 %v4471_v21  ;;  %v4959_v21 = vld [vmem:[#allocation13_spill] sm:$0xff] }
  0x8c   : > { %3300 = vmatmul.mubr.f32.gmra.mrb[10].mxu0 %v4172_v60  ;;  %3501 = vmatprep.subr.bf16.mxu1 %v4475_v26 }
  0x8d   : > { %3302 = vmatprep.mubr.f32.mxu0 %v4956_v41  ;;  %3595 = vmatpush3.bf16.msra.mxu0 %v4955_v39 }
  0x8e   : > { %3597 = vmatprep.subr.bf16.mxu0 %v4957_v54  ;;  %3063 = vmatmul.mubr.f32.gmra.mrb[12].mxu1 %v4958_v18 }
  0x8f   : > { %3065 = vmatprep.mubr.f32.mxu1 %v4254_v9  ;;  %3503 = vmatpush3.bf16.msra.mxu1 %v4475_v26  ;;  %v4961_v26 = vld [vmem:[#allocation31_spill] sm:$0xff] }
  0x90   : > { %3303 = vmatmul.mubr.f32.gmra.mrb[12].mxu0 %v4958_v18  ;;  %3505 = vmatprep.subr.bf16.mxu1 %v4477_v37 }
  0x91   : > { %3305 = vmatprep.mubr.f32.mxu0 %v4254_v9  ;;  %3599 = vmatpush3.bf16.msra.mxu0 %v4957_v54 }
  0x92   : > { %3601 = vmatprep.subr.bf16.mxu0 %v4959_v21  ;;  %3066 = vmatmul.mubr.f32.gmra.mrb[14].mxu1 %v4287_v12 }
  0x93   : > { %3068 = vmatprep.mubr.f32.mxu1 %v4300_v3  ;;  %3507 = vmatpush3.bf16.msra.mxu1 %v4477_v37  ;;  %v4963_v37 = vld [vmem:[#allocation33_spill] sm:$0xff] }
  0x94   : > { %3306 = vmatmul.mubr.f32.gmra.mrb[14].mxu0 %v4287_v12 }
  0x95   : > { %3308 = vmatprep.mubr.f32.mxu0 %v4300_v3  ;;  %3603 = vmatpush3.bf16.msra.mxu0 %v4959_v21 }
  0x96   : > { %3069 = vmatmul.mubr.f32.gmra.mrb[16].mxu1 %v4960_v23 }
  0x97   : > { %3071 = vmatprep.mubr.f32.mxu1 %v4961_v26 }
  0x98   : > { %3309 = vmatmul.mubr.f32.gmra.mrb[16].mxu0 %v4960_v23 }
  0x99   : > { %3311 = vmatprep.mubr.f32.mxu0 %v4961_v26 }
  0x9a   : > { %3072 = vmatmul.mubr.f32.gmra.mrb[18].mxu1 %v4339_v4 }
  0x9b   : > { %3074 = vmatprep.mubr.f32.mxu1 %v4962_v55 }
  0x9c   : > { %3312 = vmatmul.mubr.f32.gmra.mrb[18].mxu0 %v4339_v4 }
  0x9d   : > { %3314 = vmatprep.mubr.f32.mxu0 %v4962_v55 }
  0x9e   : > { %3075 = vmatmul.mubr.f32.gmra.mrb[20].mxu1 %v4373_v28 }
  0x9f   : > { %3077 = vmatprep.mubr.f32.mxu1 %v4387_v56 }
  0xa0   : > { %3315 = vmatmul.mubr.f32.gmra.mrb[20].mxu0 %v4373_v28 }
  0xa1   : > { %3317 = vmatprep.mubr.f32.mxu0 %v4387_v56 }
  0xa2   : > { %3078 = vmatmul.mubr.f32.gmra.mrb[22].mxu1 %v4963_v37 }
  0xa3   : > { %3080 = vmatprep.mubr.f32.mxu1 %v4419_v11 }
  0xa4   : > { %3318 = vmatmul.mubr.f32.gmra.mrb[22].mxu0 %v4963_v37 }
  0xa5   : > { %3320 = vmatprep.mubr.f32.mxu0 %v4419_v11 }
  0xa6   : > { %3081 = vmatmul.mubr.f32.gmra.mrb[24].mxu1 %v4441_v15 }
  0xa7   : > { %3083 = vmatprep.mubr.f32.mxu1 %v4445_v20 }
  0xa8   : > { %3321 = vmatmul.mubr.f32.gmra.mrb[24].mxu0 %v4441_v15 }
  0xa9   : > { %3323 = vmatprep.mubr.f32.mxu0 %v4445_v20 }
  0xaa   : > { %3084 = vmatmul.mubr.f32.gmra.mrb[26].mxu1 %v4487_v53 }
  0xab   : > { %3086 = vmatprep.mubr.f32.mxu1 %v4495_v40 }
  0xac   : > { %3324 = vmatmul.mubr.f32.gmra.mrb[26].mxu0 %v4487_v53 }
  0xad   : > { %3326 = vmatprep.mubr.f32.mxu0 %v4495_v40 }
  0xae   : > { %3087 = vmatmul.mubr.f32.gmra.mrb[28].mxu1 %v4511_v2 }
  0xaf   : > { %3089 = vmatprep.mubr.f32.mxu1 %v4520_v38 }
  0xb0   : > { %3327 = vmatmul.mubr.f32.gmra.mrb[28].mxu0 %v4511_v2 }
  0xb1   : > { %3329 = vmatprep.mubr.f32.mxu0 %v4520_v38 }
  0xb2   : > { %3090 = vmatmul.mubr.f32.gmra.mrb[30].mxu1 %v4531_v29 }
  0xb3   : > { %3124 = vmatprep.mubr.f32.mxu1 %v4964_v22 }
  0xb4   : > { %3330 = vmatmul.mubr.f32.gmra.mrb[30].mxu0 %v4531_v29 }
  0xb5   : > { %3364 = vmatprep.mubr.f32.mxu0 %v3948_v25  ;;  %v4970_v25 = vld [vmem:[#allocation18_spill] sm:$0xff] }
  0xb6   : > { %3125 = vmatmul.mubr.f32.vlgmr.msra.gmra.mrb[0].mxu1 %v4965_v58 }
  0xb7   : > { %3127 = vmatprep.mubr.f32.mxu1 %v4966_v17 }
  0xb8   : > { %3365 = vmatmul.mubr.f32.vlgmr.msra.gmra.mrb[0].mxu0 %v3970_v32  ;;  %v4971_v32 = vld [vmem:[#allocation19_spill] sm:$0xff] }
  0xb9   : > { %3367 = vmatprep.mubr.f32.mxu0 %v4009_v47  ;;  %v4972_v47 = vld [vmem:[#allocation21_spill] sm:$0xff] }
  0xba   : > { %3128 = vmatmul.mubr.f32.gmra.mrb[2].mxu1 %v4967_v30 }
  0xbb   : > { %3130 = vmatprep.mubr.f32.mxu1 %v4968_v45 }
  0xbc   : > { %3368 = vmatmul.mubr.f32.gmra.mrb[2].mxu0 %v4011_v48  ;;  %v4973_v48 = vld [vmem:[#allocation22_spill] sm:$0xff] }
  0xbd   : > { %3370 = vmatprep.mubr.f32.mxu0 %v4013_v49  ;;  %v4974_v49 = vld [vmem:[#allocation23_spill] sm:$0xff] }
  0xbe   : > { %3131 = vmatmul.mubr.f32.gmra.mrb[4].mxu1 %v4969_v35 }
  0xbf   : > { %3133 = vmatprep.mubr.f32.mxu1 %v4970_v25 }
  0xc0   : > { %3371 = vmatmul.mubr.f32.gmra.mrb[4].mxu0 %v4948_v10 }
  0xc1   : > { %3373 = vmatprep.mubr.f32.mxu0 %v4949_v19 }
  0xc2   : > { %3134 = vmatmul.mubr.f32.gmra.mrb[6].mxu1 %v4971_v32 }
  0xc3   : > { %3136 = vmatprep.mubr.f32.mxu1 %v4972_v47 }
  0xc4   : > { %3374 = vmatmul.mubr.f32.gmra.mrb[6].mxu0 %v4951_v13 }
  0xc5   : > { %3376 = vmatprep.mubr.f32.mxu0 %v4952_v6 }
  0xc6   : > { %3137 = vmatmul.mubr.f32.gmra.mrb[8].mxu1 %v4973_v48 }
  0xc7   : > { %3139 = vmatprep.mubr.f32.mxu1 %v4974_v49 }
  0xc8   : > { %3377 = vmatmul.mubr.f32.gmra.mrb[8].mxu0 %v4954_v16 }
  0xc9   : > { %3379 = vmatprep.mubr.f32.mxu0 %v4161_v8  ;;  %v4980_v8 = vld [vmem:[#allocation35_spill] sm:$0xff] }
  0xca   : > { %3140 = vmatmul.mubr.f32.gmra.mrb[10].mxu1 %v4975_v0 }
  0xcb   : > { %3142 = vmatprep.mubr.f32.mxu1 %v4976_v31 }
  0xcc   : > { %3380 = vmatmul.mubr.f32.gmra.mrb[10].mxu0 %v4172_v60  ;;  %v4979_v60 = vld [vmem:[#allocation34_spill] sm:$0xff] }
  0xcd   : > { %3382 = vmatprep.mubr.f32.mxu0 %v4956_v41 }
  0xce   : > { %3143 = vmatmul.mubr.f32.gmra.mrb[12].mxu1 %v4977_v59 }
  0xcf   : > { %3145 = vmatprep.mubr.f32.mxu1 %v4978_v24 }
  0xd0   : > { %3383 = vmatmul.mubr.f32.gmra.mrb[12].mxu0 %v4958_v18 }
  0xd1   : > { %3385 = vmatprep.mubr.f32.mxu0 %v4254_v9 }
  0xd2   : > { %3146 = vmatmul.mubr.f32.gmra.mrb[14].mxu1 %v4323_v50 }
  0xd3   : > { %3148 = vmatprep.mubr.f32.mxu1 %v4331_v5 }
  0xd4   : > { %3386 = vmatmul.mubr.f32.gmra.mrb[14].mxu0 %v4287_v12  ;;  %v4981_v12 = vld [vmem:[#allocation36_spill] sm:$0xff] }
  0xd5   : > { %3388 = vmatprep.mubr.f32.mxu0 %v4300_v3  ;;  %v4712_v3 = vld [vmem:[%s4796_s2] ss:$0 sm:$0xff] }
  0xd6   : > { %3149 = vmatmul.mubr.f32.gmra.mrb[16].mxu1 %v4334_v44 }
  0xd7   : > { %3151 = vmatprep.mubr.f32.mxu1 %v4347_v63 }
  0xd8   : > { %3389 = vmatmul.mubr.f32.gmra.mrb[16].mxu0 %v4960_v23 }
  0xd9   : > { %3391 = vmatprep.mubr.f32.mxu0 %v4961_v26 }
  0xda   : > { %3152 = vmatmul.mubr.f32.gmra.mrb[18].mxu1 %v4371_v7 }
  0xdb   : > { %3154 = vmatprep.mubr.f32.mxu1 %v4378_v52 }
  0xdc   : > { %3392 = vmatmul.mubr.f32.gmra.mrb[18].mxu0 %v4339_v4 }
  0xdd   : > { %3394 = vmatprep.mubr.f32.mxu0 %v4962_v55 }
  0xde   : > { %3155 = vmatmul.mubr.f32.gmra.mrb[20].mxu1 %v4400_v61 }
  0xdf   : > { %3157 = vmatprep.mubr.f32.mxu1 %v4417_v42 }
  0xe0   : > { %3395 = vmatmul.mubr.f32.gmra.mrb[20].mxu0 %v4373_v28 }
  0xe1   : > { %3397 = vmatprep.mubr.f32.mxu0 %v4387_v56 }
  0xe2   : > { %3158 = vmatmul.mubr.f32.gmra.mrb[22].mxu1 %v4429_v1 }
  0xe3   : > { %3160 = vmatprep.mubr.f32.mxu1 %v4979_v60 }
  0xe4   : > { %3398 = vmatmul.mubr.f32.gmra.mrb[22].mxu0 %v4963_v37 }
  0xe5   : > { %3400 = vmatprep.mubr.f32.mxu0 %v4419_v11 }
  0xe6   : > { %3161 = vmatmul.mubr.f32.gmra.mrb[24].mxu1 %v4980_v8 }
  0xe7   : > { %3163 = vmatprep.mubr.f32.mxu1 %v4981_v12 }
  0xe8   : > { %3401 = vmatmul.mubr.f32.gmra.mrb[24].mxu0 %v4441_v15 }
  0xe9   : > { %3403 = vmatprep.mubr.f32.mxu0 %v4445_v20 }
  0xea   : > { %3164 = vmatmul.mubr.f32.gmra.mrb[26].mxu1 %v4509_v43 }
  0xeb   : > { %3166 = vmatprep.mubr.f32.mxu1 %v4518_v62 }
  0xec   : > { %3404 = vmatmul.mubr.f32.gmra.mrb[26].mxu0 %v4487_v53 }
  0xed   : > { %3406 = vmatprep.mubr.f32.mxu0 %v4495_v40 }
  0xee   : > { %3167 = vmatmul.mubr.f32.gmra.mrb[28].mxu1 %v4529_v46 }
  0xef   : > { %3169 = vmatprep.mubr.f32.mxu1 %v4538_v34 }
  0xf0   : > { %3407 = vmatmul.mubr.f32.gmra.mrb[28].mxu0 %v4511_v2 }
  0xf1   : > { %3409 = vmatprep.mubr.f32.mxu0 %v4520_v38 }
  0xf2   : > { %3170 = vmatmul.mubr.f32.gmra.mrb[30].mxu1 %v4543_v33 }
  0xf4   : > { %3410 = vmatmul.mubr.f32.gmra.mrb[30].mxu0 %v4531_v29 }
 0x189   : > { %v3126_v61 = vpop.f32.mrb[0].mxu1 }
 0x18a   : > { %v1213_v5 = vpop.f32.mrb[1].mxu1 }
 0x18b   : > { %v3366_v9 = vpop.f32.mrb[0].mxu0 }
 0x18c   : > { %v3604_v50 = vadd.f32 %v3366_v9, %v3126_v61  ;;  %v2159_v44 = vpop.f32.mrb[1].mxu0 }
 0x18d   : > { %v3605_v4 = vadd.f32 %v2159_v44, %v1213_v5  ;;  %v3129_v28 = vpop.f32.mrb[2].mxu1 }
 0x18e   : > { %v2456_v63 = vadd.f32 %v3604_v50, %v4712_v3  ;;  %v1227_v42 = vpop.f32.mrb[3].mxu1 }
 0x18f   : > { %v2455_v7 = vadd.f32 %v3605_v4, %v4712_v3  ;;  %v3369_v56 = vpop.f32.mrb[2].mxu0 }
 0x190   : > { %2488 = vst [vmem:[%s4719_s7 + $0x8] sm:$0xff] %v2456_v63  ;;  %v3606_v52 = vadd.f32 %v3369_v56, %v3129_v28  ;;  %v2171_v11 = vpop.f32.mrb[3].mxu0 }
 0x191   : > { %2487 = vst [vmem:[%s4719_s7] sm:$0xff] %v2455_v7  ;;  %v3607_v15 = vadd.f32 %v2171_v11, %v1227_v42  ;;  %v3132_v53 = vpop.f32.mrb[4].mxu1 }
 0x192   : > { %v2458_v1 = vadd.f32 %v3606_v52, %v4712_v3  ;;  %v1241_v2 = vpop.f32.mrb[5].mxu1 }
 0x193   : > { %v2457_v20 = vadd.f32 %v3607_v15, %v4712_v3  ;;  %v3372_v40 = vpop.f32.mrb[4].mxu0 }
 0x194   : > { %2490 = vst [vmem:[%s4719_s7 + $0x18] sm:$0xff] %v2458_v1  ;;  %v3608_v43 = vadd.f32 %v3372_v40, %v3132_v53  ;;  %v2183_v62 = vpop.f32.mrb[5].mxu0 }
 0x195   : > { %2489 = vst [vmem:[%s4719_s7 + $0x10] sm:$0xff] %v2457_v20  ;;  %v3609_v38 = vadd.f32 %v2183_v62, %v1241_v2  ;;  %v3135_v34 = vpop.f32.mrb[6].mxu1 }
 0x196   : > { %v2460_v46 = vadd.f32 %v3608_v43, %v4712_v3  ;;  %v1255_v57 = vpop.f32.mrb[7].mxu1 }
 0x197   : > { %v2459_v29 = vadd.f32 %v3609_v38, %v4712_v3  ;;  %v3375_v33 = vpop.f32.mrb[6].mxu0 }
 0x198   : > { %2492 = vst [vmem:[%s4719_s7 + $0x28] sm:$0xff] %v2460_v46  ;;  %v3610_v14 = vadd.f32 %v3375_v33, %v3135_v34  ;;  %v2195_v51 = vpop.f32.mrb[7].mxu0 }
 0x199   : > { %2491 = vst [vmem:[%s4719_s7 + $0x20] sm:$0xff] %v2459_v29  ;;  %v3611_v10 = vadd.f32 %v2195_v51, %v1255_v57  ;;  %v3138_v13 = vpop.f32.mrb[8].mxu1 }
 0x19a   : > { %v2462_v19 = vadd.f32 %v3610_v14, %v4712_v3  ;;  %v1269_v16 = vpop.f32.mrb[9].mxu1 }
 0x19b   : > { %v2461_v27 = vadd.f32 %v3611_v10, %v4712_v3  ;;  %v3378_v6 = vpop.f32.mrb[8].mxu0 }
 0x19c   : > { %2494 = vst [vmem:[%s4719_s7 + $0x38] sm:$0xff] %v2462_v19  ;;  %v3612_v36 = vadd.f32 %v3378_v6, %v3138_v13  ;;  %v2207_v39 = vpop.f32.mrb[9].mxu0 }
 0x19d   : > { %2493 = vst [vmem:[%s4719_s7 + $0x30] sm:$0xff] %v2461_v27  ;;  %v3613_v41 = vadd.f32 %v2207_v39, %v1269_v16  ;;  %v3141_v21 = vpop.f32.mrb[10].mxu1 }
 0x19e   : > { %v2464_v54 = vadd.f32 %v3612_v36, %v4712_v3  ;;  %v1283_v55 = vpop.f32.mrb[11].mxu1 }
 0x19f   : > { %v2463_v18 = vadd.f32 %v3613_v41, %v4712_v3  ;;  %v3381_v23 = vpop.f32.mrb[10].mxu0 }
 0x1a0   : > { %2496 = vst [vmem:[%s4719_s7 + $0x48] sm:$0xff] %v2464_v54  ;;  %v3614_v26 = vadd.f32 %v3381_v23, %v3141_v21  ;;  %v2219_v37 = vpop.f32.mrb[11].mxu0 }
 0x1a1   : > { %2495 = vst [vmem:[%s4719_s7 + $0x40] sm:$0xff] %v2463_v18  ;;  %v3615_v22 = vadd.f32 %v2219_v37, %v1283_v55  ;;  %v3144_v30 = vpop.f32.mrb[12].mxu1 }
 0x1a2   : > { %v2466_v58 = vadd.f32 %v3614_v26, %v4712_v3  ;;  %v1297_v25 = vpop.f32.mrb[13].mxu1 }
 0x1a3   : > { %v2465_v17 = vadd.f32 %v3615_v22, %v4712_v3  ;;  %v3384_v45 = vpop.f32.mrb[12].mxu0 }
 0x1a4   : > { %2498 = vst [vmem:[%s4719_s7 + $0x58] sm:$0xff] %v2466_v58  ;;  %v3616_v35 = vadd.f32 %v3384_v45, %v3144_v30  ;;  %v2231_v32 = vpop.f32.mrb[13].mxu0 }
 0x1a5   : > { %2497 = vst [vmem:[%s4719_s7 + $0x50] sm:$0xff] %v2465_v17  ;;  %v3617_v47 = vadd.f32 %v2231_v32, %v1297_v25  ;;  %v3147_v0 = vpop.f32.mrb[14].mxu1 }
 0x1a6   : > { %v2468_v48 = vadd.f32 %v3616_v35, %v4712_v3  ;;  %v1311_v24 = vpop.f32.mrb[15].mxu1 }
 0x1a7   : > { %v2467_v49 = vadd.f32 %v3617_v47, %v4712_v3  ;;  %v3387_v31 = vpop.f32.mrb[14].mxu0 }
 0x1a8   : > { %2500 = vst [vmem:[%s4719_s7 + $0x68] sm:$0xff] %v2468_v48  ;;  %v3618_v59 = vadd.f32 %v3387_v31, %v3147_v0  ;;  %v2243_v60 = vpop.f32.mrb[15].mxu0 }
 0x1a9   : > { %2499 = vst [vmem:[%s4719_s7 + $0x60] sm:$0xff] %v2467_v49  ;;  %v3619_v8 = vadd.f32 %v2243_v60, %v1311_v24  ;;  %v3150_v9 = vpop.f32.mrb[16].mxu1 }
 0x1aa   : > { %v2470_v12 = vadd.f32 %v3618_v59, %v4712_v3  ;;  %v1325_v44 = vpop.f32.mrb[17].mxu1 }
 0x1ab   : > { %v2469_v61 = vadd.f32 %v3619_v8, %v4712_v3  ;;  %v3390_v50 = vpop.f32.mrb[16].mxu0 }
 0x1ac   : > { %2502 = vst [vmem:[%s4719_s7 + $0x78] sm:$0xff] %v2470_v12  ;;  %v3620_v5 = vadd.f32 %v3390_v50, %v3150_v9  ;;  %v2255_v4 = vpop.f32.mrb[17].mxu0 }
 0x1ad   : > { %2501 = vst [vmem:[%s4719_s7 + $0x70] sm:$0xff] %v2469_v61  ;;  %v3621_v63 = vadd.f32 %v2255_v4, %v1325_v44  ;;  %v3153_v56 = vpop.f32.mrb[18].mxu1 }
 0x1ae   : > { %v2472_v7 = vadd.f32 %v3620_v5, %v4712_v3  ;;  %v1339_v11 = vpop.f32.mrb[19].mxu1 }
 0x1af   : > { %v2471_v28 = vadd.f32 %v3621_v63, %v4712_v3  ;;  %v3393_v52 = vpop.f32.mrb[18].mxu0 }
 0x1b0   : > { %2504 = vst [vmem:[%s4719_s7 + $0x88] sm:$0xff] %v2472_v7  ;;  %v3622_v42 = vadd.f32 %v3393_v52, %v3153_v56  ;;  %v2267_v15 = vpop.f32.mrb[19].mxu0 }
 0x1b1   : > { %2503 = vst [vmem:[%s4719_s7 + $0x80] sm:$0xff] %v2471_v28  ;;  %v3623_v1 = vadd.f32 %v2267_v15, %v1339_v11  ;;  %v3156_v40 = vpop.f32.mrb[20].mxu1 }
 0x1b2   : > { %v2474_v20 = vadd.f32 %v3622_v42, %v4712_v3  ;;  %v1353_v62 = vpop.f32.mrb[21].mxu1 }
 0x1b3   : > { %v2473_v53 = vadd.f32 %v3623_v1, %v4712_v3  ;;  %v3396_v43 = vpop.f32.mrb[20].mxu0 }
 0x1b4   : > { %2506 = vst [vmem:[%s4719_s7 + $0x98] sm:$0xff] %v2474_v20  ;;  %v3624_v2 = vadd.f32 %v3396_v43, %v3156_v40  ;;  %v2279_v38 = vpop.f32.mrb[21].mxu0 }
 0x1b5   : > { %2505 = vst [vmem:[%s4719_s7 + $0x90] sm:$0xff] %v2473_v53  ;;  %v3625_v46 = vadd.f32 %v2279_v38, %v1353_v62  ;;  %v3159_v33 = vpop.f32.mrb[22].mxu1 }
 0x1b6   : > { %v2476_v29 = vadd.f32 %v3624_v2, %v4712_v3  ;;  %v1367_v51 = vpop.f32.mrb[23].mxu1 }
 0x1b7   : > { %v2475_v34 = vadd.f32 %v3625_v46, %v4712_v3  ;;  %v3399_v14 = vpop.f32.mrb[22].mxu0 }
 0x1b8   : > { %2508 = vst [vmem:[%s4719_s7 + $0xa8] sm:$0xff] %v2476_v29  ;;  %v3626_v57 = vadd.f32 %v3399_v14, %v3159_v33  ;;  %v2291_v10 = vpop.f32.mrb[23].mxu0 }
 0x1b9   : > { %2507 = vst [vmem:[%s4719_s7 + $0xa0] sm:$0xff] %v2475_v34  ;;  %v3627_v19 = vadd.f32 %v2291_v10, %v1367_v51  ;;  %v3162_v6 = vpop.f32.mrb[24].mxu1 }
 0x1ba   : > { %v2478_v27 = vadd.f32 %v3626_v57, %v4712_v3  ;;  %v1381_v39 = vpop.f32.mrb[25].mxu1 }
 0x1bb   : > { %v2477_v13 = vadd.f32 %v3627_v19, %v4712_v3  ;;  %v3402_v36 = vpop.f32.mrb[24].mxu0 }
 0x1bc   : > { %2510 = vst [vmem:[%s4719_s7 + $0xb8] sm:$0xff] %v2478_v27  ;;  %v3628_v16 = vadd.f32 %v3402_v36, %v3162_v6  ;;  %v2303_v41 = vpop.f32.mrb[25].mxu0 }
 0x1bd   : > { %2509 = vst [vmem:[%s4719_s7 + $0xb0] sm:$0xff] %v2477_v13  ;;  %v3629_v54 = vadd.f32 %v2303_v41, %v1381_v39  ;;  %v3165_v23 = vpop.f32.mrb[26].mxu1 }
 0x1be   : > { %v2480_v18 = vadd.f32 %v3628_v16, %v4712_v3  ;;  %v1395_v37 = vpop.f32.mrb[27].mxu1 }
 0x1bf   : > { %v2479_v21 = vadd.f32 %v3629_v54, %v4712_v3  ;;  %v3405_v26 = vpop.f32.mrb[26].mxu0 }
 0x1c0   : > { %2512 = vst [vmem:[%s4719_s7 + $0xc8] sm:$0xff] %v2480_v18  ;;  %v3630_v55 = vadd.f32 %v3405_v26, %v3165_v23  ;;  %v2315_v22 = vpop.f32.mrb[27].mxu0 }
 0x1c1   : > { %2511 = vst [vmem:[%s4719_s7 + $0xc0] sm:$0xff] %v2479_v21  ;;  %v3631_v58 = vadd.f32 %v2315_v22, %v1395_v37  ;;  %v3168_v45 = vpop.f32.mrb[28].mxu1 }
 0x1c2   : > { %v2482_v17 = vadd.f32 %v3630_v55, %v4712_v3  ;;  %v1409_v32 = vpop.f32.mrb[29].mxu1 }
 0x1c3   : > { %v2481_v30 = vadd.f32 %v3631_v58, %v4712_v3  ;;  %v3408_v35 = vpop.f32.mrb[28].mxu0 }
 0x1c4   : > { %2514 = vst [vmem:[%s4719_s7 + $0xd8] sm:$0xff] %v2482_v17  ;;  %v3632_v25 = vadd.f32 %v3408_v35, %v3168_v45  ;;  %v2327_v47 = vpop.f32.mrb[29].mxu0 }
 0x1c5   : > { %2513 = vst [vmem:[%s4719_s7 + $0xd0] sm:$0xff] %v2481_v30  ;;  %v3633_v48 = vadd.f32 %v2327_v47, %v1409_v32  ;;  %v3171_v31 = vpop.f32.mrb[30].mxu1 }
 0x1c6   : > { %v2484_v49 = vadd.f32 %v3632_v25, %v4712_v3  ;;  %v1423_v60 = vpop.f32.mrb[31].mxu1 }
 0x1c7   : > { %v2483_v0 = vadd.f32 %v3633_v48, %v4712_v3  ;;  %v3411_v59 = vpop.f32.mrb[30].mxu0 }
 0x1c8   : > { %2516 = vst [vmem:[%s4719_s7 + $0xe8] sm:$0xff] %v2484_v49  ;;  %v3634_v24 = vadd.f32 %v3411_v59, %v3171_v31  ;;  %v2339_v8 = vpop.f32.mrb[31].mxu0 }
 0x1c9   : > { %2515 = vst [vmem:[%s4719_s7 + $0xe0] sm:$0xff] %v2483_v0  ;;  %v3635_v12 = vadd.f32 %v2339_v8, %v1423_v60 }
 0x1ca   : > { %v2486_v61 = vadd.f32 %v3634_v24, %v4712_v3 }
 0x1cb   : > { %v2485_v9 = vadd.f32 %v3635_v12, %v4712_v3 }
 0x1cc   : > { %2518 = vst [vmem:[%s4719_s7 + $0xf8] sm:$0xff] %v2486_v61 }
 0x1cd   : > { %2517 = vst [vmem:[%s4719_s7 + $0xf0] sm:$0xff] %v2485_v9 }
 0x1ce PF: > { %s13_s14 = sadd.s32 1, %s3810_s14   ;;  %s4982_s12 = smov %s3806_s13 }
 0x1cf   : > { %p10_p5 = scmp.ge.s32.totalorder %s13_s14, 6   ;;  %s4983_s13 = smov %s4985_s15 }
 0x1d1   :  { %12 = sbr.rel (!%p10_p5) target bundleno = 2 (0x2), region = 76 }

</bundles_post_ra>
